<compile_context>
chip_gen: v7x
topology: tpu7x:2x2x1
jax: 0.10.0
libtpu: 0.0.40
codegen_flags: <defaults>
</compile_context>

<pallas_src>
import jax
import jax.numpy as jnp
from jax import lax
from jax.experimental import pallas as pl
from jax.experimental.pallas import tpu as pltpu

D_MODEL_SCALE = 256.0            # the module hard-codes self.d_model = 256.0
INV_D_MODEL = 1.0 / D_MODEL_SCALE  # exact power of two -> folding into Q is bit-exact
LN_EPS = 1e-6


def group_attention_kernel(ctx_ref, eos_ref, prior_ref,
                           a2_ref, b2_ref, wkT_ref, bk_ref, wqT_ref, bq_ref,
                           g_ref, n_ref):
    # ctx_ref: (S, D) f32; eos_ref: (S, S) int8; prior_ref: (S, S) f32
    # a2/b2/bk/bq: (1, D) f32; wkT/wqT: (D, D) f32 (pre-transposed: y = x @ W^T + b)
    x = ctx_ref[...].astype(jnp.float32)
    S, D = x.shape

    # ---- LayerNorm (torch.std is unbiased: divide by D-1; eps added to std) ----
    mean = jnp.mean(x, axis=-1, keepdims=True)
    diff = x - mean
    var = jnp.sum(diff * diff, axis=-1, keepdims=True) * (1.0 / (D - 1))
    std = jnp.sqrt(var)
    inv_std = pl.reciprocal(std + LN_EPS, approx=True)       # EUP, frees VALU slots
    xn = a2_ref[...] * diff * inv_std + b2_ref[...]

    # ---- Linear projections; 1/256 score scale folded into Q (exact) ----
    key = jnp.dot(xn, wkT_ref[...], preferred_element_type=jnp.float32) + bk_ref[...]
    query = (jnp.dot(xn, wqT_ref[...], preferred_element_type=jnp.float32)
             + bq_ref[...]) * INV_D_MODEL

    # ---- scores = (Q/256) K^T : contract on dim 1 of both (no key.T materialized) ----
    scores = lax.dot_general(query, key, (((1,), (1,)), ((), ())),
                             preferred_element_type=jnp.float32)

    # ---- structural masks built in-kernel ----
    row = lax.broadcasted_iota(jnp.int32, (S, S), 0)
    col = lax.broadcasted_iota(jnp.int32, (S, S), 1)
    a_m = col == row + 1          # super-diagonal (np.diag(ones, 1))
    c_m = row == col + 1          # sub-diagonal   (np.diag(ones, -1))
    b_m = row == col              # main diagonal

    # mask = eos_mask & (a + c)   (the original expression's precedence)
    eos = eos_ref[...].astype(jnp.int32) != 0
    mask = eos & (a_m | c_m)
    scores = jnp.where(mask, scores, -1.0e9)

    # ---- softmax over last dim ----
    m = jnp.max(scores, axis=-1, keepdims=True)
    e = jnp.exp(scores - m)
    attn = e * pl.reciprocal(jnp.sum(e, axis=-1, keepdims=True), approx=True)

    # ---- symmetrized neighbor attention + prior mixing ----
    prior = prior_ref[...].astype(jnp.float32)
    neibor = jnp.sqrt(attn * attn.T + 1e-9)
    neibor = prior + (1.0 - prior) * neibor

    # ---- group attention: closed-form prefix sums instead of two SxSxS matmuls ----
    # Original: t = log(neibor+1e-9) masked to the super-diagonal;
    #           g = exp(tri @ (t @ tri)) kept strictly-upper, then symmetrized.
    # Equivalent: with vlog[k] = log(neibor[k,k+1]+1e-9) and c[m] = sum_{k<m} vlog[k]:
    #           g[i,j] = exp(c[j]-c[i]) for j>i, exp(c[i]-c[j]) for i>j, 0 on diag.
    sup = jnp.where(a_m, neibor, 0.0)
    # vlog_col[i,0] = vlog[i]          (row S-1 is never used below)
    vlog_col = jnp.log(jnp.sum(sup, axis=-1, keepdims=True) + 1e-9)   # (S, 1)
    # vlog_row[0,j] = vlog[j-1], j>=1  (column 0 is never used below)
    vlog_row = jnp.log(jnp.sum(sup, axis=0, keepdims=True) + 1e-9)    # (1, S)
    # exclusive prefix sums c[m], as a column (indexed by i) and a row (indexed by j)
    c_i = jnp.sum(jnp.where((col >= 1) & (col <= row), vlog_row, 0.0),
                  axis=-1, keepdims=True)                             # (S, 1): c[i]
    c_j = jnp.sum(jnp.where(row < col, vlog_col, 0.0),
                  axis=0, keepdims=True)                              # (1, S): c[j]
    d = c_j - c_i                                                     # d[i,j] = c[j]-c[i]
    g_off = jnp.where(b_m, 0.0, jnp.exp(jnp.where(col > row, d, -d)))
    g = g_off + jnp.where(b_m, neibor, 1e-9)

    g_ref[...] = g.astype(g_ref.dtype)
    n_ref[...] = neibor.astype(n_ref.dtype)


def group_attention(context, eos_mask, prior, params):
    B, S, D = context.shape
    f32 = jnp.float32

    a2 = params["a_2"].reshape(1, D).astype(f32)
    b2 = params["b_2"].reshape(1, D).astype(f32)
    wkT = params["w_key"].T.astype(f32)      # (D_in, D_out) so that y = x @ W^T
    bk = params["b_key"].reshape(1, D).astype(f32)
    wqT = params["w_query"].T.astype(f32)
    bq = params["b_query"].reshape(1, D).astype(f32)

    context = context.astype(f32)
    prior = prior.astype(f32)
    # Shrink the largest per-batch HBM->VMEM streams: the eos mask only carries 0/1.
    eos_i8 = (eos_mask != 0).astype(jnp.int8)

    grid_spec = pltpu.PrefetchScalarGridSpec(
        num_scalar_prefetch=0,
        grid=(B,),
        in_specs=[
            pl.BlockSpec((None, S, D), lambda b: (b, 0, 0)),   # context
            pl.BlockSpec((None, S, S), lambda b: (b, 0, 0)),   # eos_mask (int8)
            pl.BlockSpec((None, S, S), lambda b: (b, 0, 0)),   # prior
            pl.BlockSpec((1, D), lambda b: (0, 0)),            # a_2
            pl.BlockSpec((1, D), lambda b: (0, 0)),            # b_2
            pl.BlockSpec((D, D), lambda b: (0, 0)),            # W_key^T
            pl.BlockSpec((1, D), lambda b: (0, 0)),            # b_key
            pl.BlockSpec((D, D), lambda b: (0, 0)),            # W_query^T
            pl.BlockSpec((1, D), lambda b: (0, 0)),            # b_query
        ],
        out_specs=[
            pl.BlockSpec((None, S, S), lambda b: (b, 0, 0)),   # g_attn
            pl.BlockSpec((None, S, S), lambda b: (b, 0, 0)),   # neibor_attn
        ],
    )

    # Explicit scoped-VMEM budget: double-buffered I/O + params + in-kernel temporaries,
    # with margin, capped at 64 MiB so the setting is legal on v7x (64 MiB physical).
    io_bytes = (2 * S * D * 4            # context
                + 2 * S * S * 1          # eos mask (int8)
                + 2 * S * S * 4          # prior
                + 2 * 2 * S * S * 4      # two (S, S) f32 outputs
                + 2 * (2 * D * D + 4 * D) * 4)   # weights + biases + LN params
    tmp_bytes = 12 * S * S * 4 + 6 * S * D * 4
    vmem_limit = int(min(max(int(1.25 * (io_bytes + tmp_bytes)), 32 * 1024 * 1024),
                         64 * 1024 * 1024))

    return pl.pallas_call(
        group_attention_kernel,
        out_shape=(jax.ShapeDtypeStruct((B, S, S), f32),
                   jax.ShapeDtypeStruct((B, S, S), f32)),
        grid_spec=grid_spec,
        compiler_params=pltpu.CompilerParams(
            dimension_semantics=("parallel",),
            vmem_limit_bytes=vmem_limit,
        ),
    )(context, eos_i8, prior, a2, b2, wkT, bk, wqT, bq)


def group_attention_reference(context, eos_mask, prior, params):
    """Pure-JAX port of the PyTorch forward, for validation only."""
    B, S, D = context.shape
    x = context.astype(jnp.float32)
    mean = jnp.mean(x, axis=-1, keepdims=True)
    var = jnp.sum((x - mean) ** 2, axis=-1, keepdims=True) / (D - 1)
    std = jnp.sqrt(var)
    xn = params["a_2"] * (x - mean) / (std + LN_EPS) + params["b_2"]

    key = xn @ params["w_key"].T + params["b_key"]
    query = xn @ params["w_query"].T + params["b_query"]
    scores = jnp.einsum("bqd,bkd->bqk", query, key) / D_MODEL_SCALE

    eye = jnp.eye(S, dtype=jnp.float32)
    a = jnp.eye(S, k=1, dtype=jnp.float32)
    c = jnp.eye(S, k=-1, dtype=jnp.float32)
    tri = jnp.triu(jnp.ones((S, S), jnp.float32))
    mask = (eos_mask != 0) & ((a + c) != 0)
    scores = jnp.where(mask, scores, -1e9)
    attn = jax.nn.softmax(scores, axis=-1)
    neibor = jnp.sqrt(attn * jnp.swapaxes(attn, -1, -2) + 1e-9)
    neibor = prior.astype(jnp.float32) + (1.0 - prior.astype(jnp.float32)) * neibor
    t = jnp.where(a != 0, jnp.log(neibor + 1e-9), 0.0) @ tri
    g = jnp.exp(tri @ t)
    g = jnp.where((tri - eye) != 0, g, 0.0)
    g = g + jnp.swapaxes(g, -1, -2) + jnp.where(eye != 0, neibor, 1e-9)
    return g, neibor


if __name__ == "__main__":
    B, S, D = 2, 8, 32

    key = jax.random.PRNGKey(0)
    k_ctx, k_eos, k_prior, k_wk, k_bk, k_wq, k_bq = jax.random.split(key, 7)

    context = jax.random.normal(k_ctx, (B, S, D), dtype=jnp.float32)
    eos_mask = jax.random.bernoulli(k_eos, p=0.9, shape=(B, S, S)).astype(jnp.int32)
    prior = jax.random.uniform(k_prior, (B, S, S), dtype=jnp.float32) * 0.3

    params = {
        "a_2": jnp.ones((D,), jnp.float32),
        "b_2": jnp.zeros((D,), jnp.float32),
        "w_key": jax.random.normal(k_wk, (D, D), jnp.float32) * 0.1,   # nn.Linear weight (out, in)
        "b_key": jax.random.normal(k_bk, (D,), jnp.float32) * 0.1,
        "w_query": jax.random.normal(k_wq, (D, D), jnp.float32) * 0.1,
        "b_query": jax.random.normal(k_bq, (D,), jnp.float32) * 0.1,
    }

    g_attn, neibor_attn = group_attention(context, eos_mask, prior, params)
    jax.block_until_ready((g_attn, neibor_attn))

    assert g_attn.shape == (B, S, S) and neibor_attn.shape == (B, S, S)
    assert bool(jnp.all(jnp.isfinite(g_attn))) and bool(jnp.all(jnp.isfinite(neibor_attn)))

    # Loose-tolerance check vs. a pure-JAX port (approx reciprocals + reordered sums
    # introduce only small numerical differences; structural errors would be O(1)).
    g_ref, n_ref = group_attention_reference(context, eos_mask, prior, params)
    assert bool(jnp.allclose(neibor_attn, n_ref, rtol=0.1, atol=0.02))
    assert bool(jnp.allclose(g_attn, g_ref, rtol=0.1, atol=0.02))

    print("KERNEL_OK")
</pallas_src>

<mosaic_0001>
module attributes {stable_mosaic.version = 11 : i64} {
  func.func @group_attention_kernel(%arg0: i32, %arg1: memref<1x8x32xf32, #tpu.memory_space<vmem>>, %arg2: memref<1x8x8xi8, #tpu.memory_space<vmem>>, %arg3: memref<1x8x8xf32, #tpu.memory_space<vmem>>, %arg4: memref<1x32xf32, #tpu.memory_space<vmem>>, %arg5: memref<1x32xf32, #tpu.memory_space<vmem>>, %arg6: memref<32x32xf32, #tpu.memory_space<vmem>>, %arg7: memref<1x32xf32, #tpu.memory_space<vmem>>, %arg8: memref<32x32xf32, #tpu.memory_space<vmem>>, %arg9: memref<1x32xf32, #tpu.memory_space<vmem>>, %arg10: memref<1x8x8xf32, #tpu.memory_space<vmem>>, %arg11: memref<1x8x8xf32, #tpu.memory_space<vmem>>) attributes {dimension_semantics = [#tpu.dimension_semantics<parallel>], iteration_bounds = array<i64: 2>, scalar_prefetch = 0 : i64, scratch_operands = 0 : i64, tpu.core_type = #tpu.core_type<tc>, window_params = [{transform_indices = @transform_0, window_bounds = array<i64: 1, 8, 32>}, {transform_indices = @transform_1, window_bounds = array<i64: 1, 8, 8>}, {transform_indices = @transform_2, window_bounds = array<i64: 1, 8, 8>}, {pipeline_mode = #tpu.pipeline_mode<synchronous>, transform_indices = @transform_3, window_bounds = array<i64: 1, 32>}, {pipeline_mode = #tpu.pipeline_mode<synchronous>, transform_indices = @transform_4, window_bounds = array<i64: 1, 32>}, {pipeline_mode = #tpu.pipeline_mode<synchronous>, transform_indices = @transform_5, window_bounds = array<i64: 32, 32>}, {pipeline_mode = #tpu.pipeline_mode<synchronous>, transform_indices = @transform_6, window_bounds = array<i64: 1, 32>}, {pipeline_mode = #tpu.pipeline_mode<synchronous>, transform_indices = @transform_7, window_bounds = array<i64: 32, 32>}, {pipeline_mode = #tpu.pipeline_mode<synchronous>, transform_indices = @transform_8, window_bounds = array<i64: 1, 32>}, {transform_indices = @transform_9, window_bounds = array<i64: 1, 8, 8>}, {transform_indices = @transform_10, window_bounds = array<i64: 1, 8, 8>}]} {
    %c0 = arith.constant 0 : index
    %c0_0 = arith.constant 0 : index
    %c0_1 = arith.constant 0 : index
    %0 = vector.load %arg1[%c0, %c0_0, %c0_1] : memref<1x8x32xf32, #tpu.memory_space<vmem>>, vector<1x8x32xf32>
    %1 = vector.shape_cast %0 : vector<1x8x32xf32> to vector<8x32xf32>
    %cst = arith.constant dense<0.000000e+00> : vector<8xf32>
    %2 = vector.multi_reduction <add>, %1, %cst [1] : vector<8x32xf32> to vector<8xf32>
    %3 = vector.shape_cast %2 : vector<8xf32> to vector<8x1xf32>
    %cst_2 = arith.constant 3.200000e+01 : f32
    %4 = vector.broadcast %cst_2 : f32 to vector<8x1xf32>
    %5 = arith.divf %3, %4 : vector<8x1xf32>
    %6 = vector.broadcast %5 : vector<8x1xf32> to vector<8x32xf32>
    %7 = arith.subf %1, %6 : vector<8x32xf32>
    %8 = arith.mulf %7, %7 : vector<8x32xf32>
    %cst_3 = arith.constant dense<0.000000e+00> : vector<8xf32>
    %9 = vector.multi_reduction <add>, %8, %cst_3 [1] : vector<8x32xf32> to vector<8xf32>
    %10 = vector.shape_cast %9 : vector<8xf32> to vector<8x1xf32>
    %cst_4 = arith.constant 0.0322580636 : f32
    %11 = vector.broadcast %cst_4 : f32 to vector<8x1xf32>
    %12 = arith.mulf %10, %11 : vector<8x1xf32>
    %13 = math.sqrt %12 : vector<8x1xf32>
    %cst_5 = arith.constant 9.99999997E-7 : f32
    %14 = vector.broadcast %cst_5 : f32 to vector<8x1xf32>
    %15 = arith.addf %13, %14 : vector<8x1xf32>
    %16 = tpu.reciprocal %15 {approx = true} : vector<8x1xf32> -> vector<8x1xf32>
    %c0_6 = arith.constant 0 : index
    %c0_7 = arith.constant 0 : index
    %17 = vector.load %arg4[%c0_6, %c0_7] : memref<1x32xf32, #tpu.memory_space<vmem>>, vector<1x32xf32>
    %18 = vector.broadcast %17 : vector<1x32xf32> to vector<8x32xf32>
    %19 = arith.mulf %18, %7 : vector<8x32xf32>
    %20 = vector.broadcast %16 : vector<8x1xf32> to vector<8x32xf32>
    %21 = arith.mulf %19, %20 : vector<8x32xf32>
    %c0_8 = arith.constant 0 : index
    %c0_9 = arith.constant 0 : index
    %22 = vector.load %arg5[%c0_8, %c0_9] : memref<1x32xf32, #tpu.memory_space<vmem>>, vector<1x32xf32>
    %23 = vector.broadcast %22 : vector<1x32xf32> to vector<8x32xf32>
    %24 = arith.addf %21, %23 : vector<8x32xf32>
    %c0_10 = arith.constant 0 : index
    %c0_11 = arith.constant 0 : index
    %25 = vector.load %arg6[%c0_10, %c0_11] : memref<32x32xf32, #tpu.memory_space<vmem>>, vector<32x32xf32>
    %cst_12 = arith.constant dense<0.000000e+00> : vector<8x32xf32>
    %26 = tpu.matmul %24, %25, %cst_12 {dimension_numbers = #tpu.dot_dimension_numbers<[1], [0], [0], [1], [0, 0, 1, 1], [], []>} : vector<8x32xf32>, vector<32x32xf32>, vector<8x32xf32> -> vector<8x32xf32>
    %c0_13 = arith.constant 0 : index
    %c0_14 = arith.constant 0 : index
    %27 = vector.load %arg7[%c0_13, %c0_14] : memref<1x32xf32, #tpu.memory_space<vmem>>, vector<1x32xf32>
    %28 = vector.broadcast %27 : vector<1x32xf32> to vector<8x32xf32>
    %29 = arith.addf %26, %28 : vector<8x32xf32>
    %c0_15 = arith.constant 0 : index
    %c0_16 = arith.constant 0 : index
    %30 = vector.load %arg8[%c0_15, %c0_16] : memref<32x32xf32, #tpu.memory_space<vmem>>, vector<32x32xf32>
    %cst_17 = arith.constant dense<0.000000e+00> : vector<8x32xf32>
    %31 = tpu.matmul %24, %30, %cst_17 {dimension_numbers = #tpu.dot_dimension_numbers<[1], [0], [0], [1], [0, 0, 1, 1], [], []>} : vector<8x32xf32>, vector<32x32xf32>, vector<8x32xf32> -> vector<8x32xf32>
    %c0_18 = arith.constant 0 : index
    %c0_19 = arith.constant 0 : index
    %32 = vector.load %arg9[%c0_18, %c0_19] : memref<1x32xf32, #tpu.memory_space<vmem>>, vector<1x32xf32>
    %33 = vector.broadcast %32 : vector<1x32xf32> to vector<8x32xf32>
    %34 = arith.addf %31, %33 : vector<8x32xf32>
    %cst_20 = arith.constant 3.906250e-03 : f32
    %35 = vector.broadcast %cst_20 : f32 to vector<8x32xf32>
    %36 = arith.mulf %34, %35 : vector<8x32xf32>
    %cst_21 = arith.constant dense<0.000000e+00> : vector<8x8xf32>
    %37 = tpu.matmul %36, %29, %cst_21 {dimension_numbers = #tpu.dot_dimension_numbers<[1], [1], [0], [0], [0, 0, 1, 0], [], []>} : vector<8x32xf32>, vector<8x32xf32>, vector<8x8xf32> -> vector<8x8xf32>
    %38 = tpu.iota {dimensions = array<i32: 0>} : vector<8x8xi32>
    %39 = tpu.iota {dimensions = array<i32: 1>} : vector<8x8xi32>
    %c1_i32 = arith.constant 1 : i32
    %40 = vector.broadcast %c1_i32 : i32 to vector<8x8xi32>
    %41 = arith.addi %38, %40 : vector<8x8xi32>
    %42 = arith.cmpi eq, %39, %41 : vector<8x8xi32>
    %c1_i32_22 = arith.constant 1 : i32
    %43 = vector.broadcast %c1_i32_22 : i32 to vector<8x8xi32>
    %44 = arith.addi %39, %43 : vector<8x8xi32>
    %45 = arith.cmpi eq, %38, %44 : vector<8x8xi32>
    %46 = arith.cmpi eq, %38, %39 : vector<8x8xi32>
    %c0_23 = arith.constant 0 : index
    %c0_24 = arith.constant 0 : index
    %c0_25 = arith.constant 0 : index
    %47 = vector.load %arg2[%c0_23, %c0_24, %c0_25] : memref<1x8x8xi8, #tpu.memory_space<vmem>>, vector<1x8x8xi8>
    %48 = vector.shape_cast %47 : vector<1x8x8xi8> to vector<8x8xi8>
    %49 = arith.extsi %48 : vector<8x8xi8> to vector<8x8xi32>
    %c0_i32 = arith.constant 0 : i32
    %50 = vector.broadcast %c0_i32 : i32 to vector<8x8xi32>
    %51 = arith.cmpi ne, %49, %50 : vector<8x8xi32>
    %52 = arith.ori %42, %45 : vector<8x8xi1>
    %53 = arith.andi %51, %52 : vector<8x8xi1>
    %cst_26 = arith.constant -1.000000e+09 : f32
    %54 = vector.broadcast %cst_26 : f32 to vector<8x8xf32>
    %55 = arith.select %53, %37, %54 : vector<8x8xi1>, vector<8x8xf32>
    %cst_27 = arith.constant dense<0xFF800000> : vector<8xf32>
    %56 = vector.multi_reduction <maximumf>, %55, %cst_27 [1] : vector<8x8xf32> to vector<8xf32>
    %57 = vector.shape_cast %56 : vector<8xf32> to vector<8x1xf32>
    %58 = vector.broadcast %57 : vector<8x1xf32> to vector<8x8xf32>
    %59 = arith.subf %55, %58 : vector<8x8xf32>
    %60 = math.exp %59 : vector<8x8xf32>
    %cst_28 = arith.constant dense<0.000000e+00> : vector<8xf32>
    %61 = vector.multi_reduction <add>, %60, %cst_28 [1] : vector<8x8xf32> to vector<8xf32>
    %62 = vector.shape_cast %61 : vector<8xf32> to vector<8x1xf32>
    %63 = tpu.reciprocal %62 {approx = true} : vector<8x1xf32> -> vector<8x1xf32>
    %64 = vector.broadcast %63 : vector<8x1xf32> to vector<8x8xf32>
    %65 = arith.mulf %60, %64 : vector<8x8xf32>
    %c0_29 = arith.constant 0 : index
    %c0_30 = arith.constant 0 : index
    %c0_31 = arith.constant 0 : index
    %66 = vector.load %arg3[%c0_29, %c0_30, %c0_31] : memref<1x8x8xf32, #tpu.memory_space<vmem>>, vector<1x8x8xf32>
    %67 = vector.shape_cast %66 : vector<1x8x8xf32> to vector<8x8xf32>
    %68 = tpu.transpose %65, [1, 0] : vector<8x8xf32> -> vector<8x8xf32>
    %69 = arith.mulf %65, %68 : vector<8x8xf32>
    %cst_32 = arith.constant 9.99999971E-10 : f32
    %70 = vector.broadcast %cst_32 : f32 to vector<8x8xf32>
    %71 = arith.addf %69, %70 : vector<8x8xf32>
    %72 = math.sqrt %71 : vector<8x8xf32>
    %cst_33 = arith.constant 1.000000e+00 : f32
    %73 = vector.broadcast %cst_33 : f32 to vector<8x8xf32>
    %74 = arith.subf %73, %67 : vector<8x8xf32>
    %75 = arith.mulf %74, %72 : vector<8x8xf32>
    %76 = arith.addf %67, %75 : vector<8x8xf32>
    %cst_34 = arith.constant 0.000000e+00 : f32
    %77 = vector.broadcast %cst_34 : f32 to vector<8x8xf32>
    %78 = arith.select %42, %76, %77 : vector<8x8xi1>, vector<8x8xf32>
    %cst_35 = arith.constant dense<0.000000e+00> : vector<8xf32>
    %79 = vector.multi_reduction <add>, %78, %cst_35 [1] : vector<8x8xf32> to vector<8xf32>
    %80 = vector.shape_cast %79 : vector<8xf32> to vector<8x1xf32>
    %cst_36 = arith.constant 9.99999971E-10 : f32
    %81 = vector.broadcast %cst_36 : f32 to vector<8x1xf32>
    %82 = arith.addf %80, %81 : vector<8x1xf32>
    %83 = math.log %82 : vector<8x1xf32>
    %cst_37 = arith.constant dense<0.000000e+00> : vector<8xf32>
    %84 = vector.multi_reduction <add>, %78, %cst_37 [0] : vector<8x8xf32> to vector<8xf32>
    %85 = vector.shape_cast %84 : vector<8xf32> to vector<1x8xf32>
    %cst_38 = arith.constant 9.99999971E-10 : f32
    %86 = vector.broadcast %cst_38 : f32 to vector<1x8xf32>
    %87 = arith.addf %85, %86 : vector<1x8xf32>
    %88 = math.log %87 : vector<1x8xf32>
    %c1_i32_39 = arith.constant 1 : i32
    %89 = vector.broadcast %c1_i32_39 : i32 to vector<8x8xi32>
    %90 = arith.cmpi sge, %39, %89 : vector<8x8xi32>
    %91 = arith.cmpi sle, %39, %38 : vector<8x8xi32>
    %92 = arith.andi %90, %91 : vector<8x8xi1>
    %cst_40 = arith.constant 0.000000e+00 : f32
    %93 = vector.shape_cast %88 : vector<1x8xf32> to vector<1x8xf32>
    %94 = vector.broadcast %93 : vector<1x8xf32> to vector<8x8xf32>
    %95 = vector.broadcast %cst_40 : f32 to vector<8x8xf32>
    %96 = arith.select %92, %94, %95 : vector<8x8xi1>, vector<8x8xf32>
    %cst_41 = arith.constant dense<0.000000e+00> : vector<8xf32>
    %97 = vector.multi_reduction <add>, %96, %cst_41 [1] : vector<8x8xf32> to vector<8xf32>
    %98 = vector.shape_cast %97 : vector<8xf32> to vector<8x1xf32>
    %99 = arith.cmpi slt, %38, %39 : vector<8x8xi32>
    %cst_42 = arith.constant 0.000000e+00 : f32
    %100 = vector.shape_cast %83 : vector<8x1xf32> to vector<8x1xf32>
    %101 = vector.broadcast %100 : vector<8x1xf32> to vector<8x8xf32>
    %102 = vector.broadcast %cst_42 : f32 to vector<8x8xf32>
    %103 = arith.select %99, %101, %102 : vector<8x8xi1>, vector<8x8xf32>
    %cst_43 = arith.constant dense<0.000000e+00> : vector<8xf32>
    %104 = vector.multi_reduction <add>, %103, %cst_43 [0] : vector<8x8xf32> to vector<8xf32>
    %105 = vector.shape_cast %104 : vector<8xf32> to vector<1x8xf32>
    %106 = vector.broadcast %105 : vector<1x8xf32> to vector<8x8xf32>
    %107 = vector.broadcast %98 : vector<8x1xf32> to vector<8x8xf32>
    %108 = arith.subf %106, %107 : vector<8x8xf32>
    %109 = arith.cmpi sgt, %39, %38 : vector<8x8xi32>
    %cst_44 = arith.constant 0.000000e+00 : f32
    %110 = vector.broadcast %cst_44 : f32 to vector<8x8xf32>
    %111 = arith.subf %110, %108 : vector<8x8xf32>
    %112 = arith.select %109, %108, %111 : vector<8x8xi1>, vector<8x8xf32>
    %113 = math.exp %112 : vector<8x8xf32>
    %cst_45 = arith.constant 0.000000e+00 : f32
    %114 = vector.broadcast %cst_45 : f32 to vector<8x8xf32>
    %115 = arith.select %46, %114, %113 : vector<8x8xi1>, vector<8x8xf32>
    %cst_46 = arith.constant 9.99999971E-10 : f32
    %116 = vector.broadcast %cst_46 : f32 to vector<8x8xf32>
    %117 = arith.select %46, %76, %116 : vector<8x8xi1>, vector<8x8xf32>
    %118 = arith.addf %115, %117 : vector<8x8xf32>
    %c0_47 = arith.constant 0 : index
    %c0_48 = arith.constant 0 : index
    %c0_49 = arith.constant 0 : index
    %119 = vector.load %arg10[%c0_47, %c0_48, %c0_49] : memref<1x8x8xf32, #tpu.memory_space<vmem>>, vector<1x8x8xf32>
    %120 = vector.shape_cast %119 : vector<1x8x8xf32> to vector<8x8xf32>
    %121 = vector.shape_cast %118 : vector<8x8xf32> to vector<1x8x8xf32>
    tpu.vector_store %arg10[%c0_47, %c0_48, %c0_49], %121 {strides = array<i32>} : memref<1x8x8xf32, #tpu.memory_space<vmem>>, vector<1x8x8xf32>,
    %c0_50 = arith.constant 0 : index
    %c0_51 = arith.constant 0 : index
    %c0_52 = arith.constant 0 : index
    %122 = vector.load %arg11[%c0_50, %c0_51, %c0_52] : memref<1x8x8xf32, #tpu.memory_space<vmem>>, vector<1x8x8xf32>
    %123 = vector.shape_cast %122 : vector<1x8x8xf32> to vector<8x8xf32>
    %124 = vector.shape_cast %76 : vector<8x8xf32> to vector<1x8x8xf32>
    tpu.vector_store %arg11[%c0_50, %c0_51, %c0_52], %124 {strides = array<i32>} : memref<1x8x8xf32, #tpu.memory_space<vmem>>, vector<1x8x8xf32>,
    return
  }
  func.func @transform_0(%arg0: i32) -> (i32, i32, i32) {
    %c0_i32 = arith.constant 0 : i32
    %c0_i32_0 = arith.constant 0 : i32
    %c0_i32_1 = arith.constant 0 : i32
    return %arg0, %c0_i32, %c0_i32_0 : i32, i32, i32
  }
  func.func @transform_1(%arg0: i32) -> (i32, i32, i32) {
    %c0_i32 = arith.constant 0 : i32
    %c0_i32_0 = arith.constant 0 : i32
    %c0_i32_1 = arith.constant 0 : i32
    return %arg0, %c0_i32, %c0_i32_0 : i32, i32, i32
  }
  func.func @transform_2(%arg0: i32) -> (i32, i32, i32) {
    %c0_i32 = arith.constant 0 : i32
    %c0_i32_0 = arith.constant 0 : i32
    %c0_i32_1 = arith.constant 0 : i32
    return %arg0, %c0_i32, %c0_i32_0 : i32, i32, i32
  }
  func.func @transform_3(%arg0: i32) -> (i32, i32) {
    %c0_i32 = arith.constant 0 : i32
    %c0_i32_0 = arith.constant 0 : i32
    %c0_i32_1 = arith.constant 0 : i32
    return %c0_i32, %c0_i32_0 : i32, i32
  }
  func.func @transform_4(%arg0: i32) -> (i32, i32) {
    %c0_i32 = arith.constant 0 : i32
    %c0_i32_0 = arith.constant 0 : i32
    %c0_i32_1 = arith.constant 0 : i32
    return %c0_i32, %c0_i32_0 : i32, i32
  }
  func.func @transform_5(%arg0: i32) -> (i32, i32) {
    %c0_i32 = arith.constant 0 : i32
    %c0_i32_0 = arith.constant 0 : i32
    %c0_i32_1 = arith.constant 0 : i32
    return %c0_i32, %c0_i32_0 : i32, i32
  }
  func.func @transform_6(%arg0: i32) -> (i32, i32) {
    %c0_i32 = arith.constant 0 : i32
    %c0_i32_0 = arith.constant 0 : i32
    %c0_i32_1 = arith.constant 0 : i32
    return %c0_i32, %c0_i32_0 : i32, i32
  }
  func.func @transform_7(%arg0: i32) -> (i32, i32) {
    %c0_i32 = arith.constant 0 : i32
    %c0_i32_0 = arith.constant 0 : i32
    %c0_i32_1 = arith.constant 0 : i32
    return %c0_i32, %c0_i32_0 : i32, i32
  }
  func.func @transform_8(%arg0: i32) -> (i32, i32) {
    %c0_i32 = arith.constant 0 : i32
    %c0_i32_0 = arith.constant 0 : i32
    %c0_i32_1 = arith.constant 0 : i32
    return %c0_i32, %c0_i32_0 : i32, i32
  }
  func.func @transform_9(%arg0: i32) -> (i32, i32, i32) {
    %c0_i32 = arith.constant 0 : i32
    %c0_i32_0 = arith.constant 0 : i32
    %c0_i32_1 = arith.constant 0 : i32
    return %arg0, %c0_i32, %c0_i32_0 : i32, i32, i32
  }
  func.func @transform_10(%arg0: i32) -> (i32, i32, i32) {
    %c0_i32 = arith.constant 0 : i32
    %c0_i32_0 = arith.constant 0 : i32
    %c0_i32_1 = arith.constant 0 : i32
    return %arg0, %c0_i32, %c0_i32_0 : i32, i32, i32
  }
}

</mosaic_0001>

<bundles_post_ra>
// kernel: tpu_custom_call.1
= control target key start
LH: loop header
LB: loop body
LE: loop exit
PB: predicated region body
PF: predicated region fallthrough
CT: control target
= control target key end

     0   :  { %s1977_s0 = inlined_call_operand.hbm [shape: f32[2,8,32], index: 0, kind: input, shape index: {}]   ;;  %s1978_s1 = inlined_call_operand.hbm [shape: s8[2,8,8], index: 1, kind: input, shape index: {}]   ;;  %s1979_s2 = inlined_call_operand.hbm [shape: f32[2,8,8], index: 2, kind: input, shape index: {}]   ;;  %s1980_s3 = inlined_call_operand.vmem [shape: f32[1,32], index: 3, kind: input, shape index: {}]   ;;  %s1981_s4 = inlined_call_operand.vmem [shape: f32[1,32], index: 4, kind: input, shape index: {}]   ;;  %s1982_s5 = inlined_call_operand.hbm [shape: f32[32,32], index: 5, kind: input, shape index: {}]   ;;  %s1983_s6 = inlined_call_operand.vmem [shape: f32[1,32], index: 6, kind: input, shape index: {}]   ;;  %s1984_s7 = inlined_call_operand.hbm [shape: f32[32,32], index: 7, kind: input, shape index: {}]   ;;  %s1985_s8 = inlined_call_operand.vmem [shape: f32[1,32], index: 8, kind: input, shape index: {}]   ;;  %s1986_s9 = inlined_call_operand.hbm [shape: f32[2,8,8], index: 9, kind: output, shape index: {0}]   ;;  %s1987_s10 = inlined_call_operand.hbm [shape: f32[2,8,8], index: 10, kind: output, shape index: {1}]  }
   0x1   :  { %2008 = sst [smem:[#allocation24_spill]] %s1978_s1 }
   0x2   :  { %2009 = sst [smem:[#allocation25_spill]] %s1982_s5 }
   0x3   :  { %2010 = sst [smem:[#allocation26_spill]] %s1986_s9 }
   0x4   :  { %16 = vsyncpa [#allocation3], 0 }
   0x5   :  { %18 = vsyncpa [#allocation3 + $0x1], 0 }
   0x6   :  { %19 = vsyncpa [#allocation6], 0 }
   0x7   :  { %21 = vsyncpa [#allocation6 + $0x1], 0 }
   0x8   :  { %22 = vsyncpa [#allocation9], 0 }
   0x9   :  { %23 = vsyncpa [#allocation4], 0 }
   0xa   :  { %25 = vsyncpa [#allocation4 + $0x1], 0 }
   0xb   :  { %26 = vsyncpa [#allocation13], 0 }
   0xc   :  { %28 = vsyncpa [#allocation13 + $0x1], 0  ;;  %s1586_s13 = smov 0   ;;  %s1588_s14 = smov 0  }
   0xd   :  { %s1590_s15 = smov 0   ;;  %s1592_s16 = smov 0  }
   0xe LB: > { %2011 = sst [smem:[#allocation19_spill]] %s1505_s13  ;;  %s1607_s17 = sadd.s32 4294967295, %s1517_s16   ;;  %s1517_s16 = sphi %s1592_s16, %s2045_s16   ;;  %s1513_s15 = sphi %s1590_s15, %s2047_s15   ;;  %s1509_s14 = sphi %s1588_s14, %s2049_s14   ;;  %s1505_s13 = sphi %s1586_s13, %s2048_s13  }
   0xf   : > { %2012 = sst [smem:[#allocation20_spill]] %s1513_s15  ;;  %s1078_s18 = sadd.s32 4294967294, %s1517_s16  }
  0x10   : > { %p54_p0 = scmp.ne.s32.totalorder %s1509_s14, %s1505_s13  ;;  %p1988_p1 = scmp.eq.s32.totalorder %s1607_s17, 0 }
  0x11   : > { %p262_p3 = scmp.eq.s32.totalorder %s1078_s18, 1  ;;  %p1079_p5 = scmp.ge.s32.totalorder %s1517_s16, 1 }
  0x12   : > { %p1616_p4 = por %p1988_p1, %p54_p0  ;;  %p295_p7 = scmp.lt.s32.totalorder %s1517_s16, 3 }
  0x13   : > { %p1621_p6 = por %p262_p3, %p54_p0  ;;  %s1519_s22 = smov [#allocation8]  }
  0x14   : > { %s2013_s19 = scalar_select %p1616_p4, 1, 0 }
  0x15   : > { %s2014_s20 = scalar_select %p1621_p6, 1, 0 }
  0x16   : > { %p1626_p8 = pnand %p1079_p5, %p295_p7  ;;  %s313_s23 = sshll.u32 %s1519_s22, 4  ;;  %s1630_s23 = int_to_ptr.vmem [resolvable:$true] %s313_s23 }
  0x17   : > { %2015 = sst [smem:[#allocation21_spill]] %s2014_s20  ;;  %s1642_s25 = sadd.s32 1, %s1517_s16  }
  0x18   : > { %s2016_s21 = scalar_select %p1626_p8, 1, 0 }
  0x19   : > { %p1180_p9 = pneg %p1626_p8  ;;  %2018 = sst [smem:[#allocation22_spill]] %s1642_s25 }
  0x1a   : > { %s41_s26 = sadd.s32 1, %s1513_s15  ;;  %s38_s27 = ssub.s32 %s1517_s16, %s1642_s25 }
  0x1b   : > { %p1637_p11 = pnand %p1180_p9, %p1988_p1  ;;  %s2019_s5 = sld [smem:[#allocation25_spill]] }
  0x1d   : > { %s2017_s24 = scalar_select %p1637_p11, 1, 0 }
  0x1e   : > { %p1995_p13 = pneg %p1637_p11 }
  0x21   : > { %s1265_s30 = scalar_lea.hbm %s2019_s5, 512 }
  0x22   : > { %p1266_p12 = scmp.ne.s32.totalorder %s2019_s5, %s1265_s30  ;;  %p1272_p5 = scmp.lt.u32.totalorder %s1265_s30, %s2019_s5 }
  0x24   : > { %p1268_p0 = pnand %p1995_p13, %p1266_p12 }
  0x26   : > { %p1269_p3 = pneg %p1268_p0 }
  0x28   : > { %p1274_p7 = pnand %p1272_p5, %p1269_p3 }
  0x2a   : > { %1277 = shalt.err (!%p1274_p7)
}
  0x2b   : > { %s1278_s28 = scalar_lea.vmem %s1630_s23, 512  ;;  %p1286_p2 = scmp.lt.s32.totalorder %s1630_s23, %s1630_s23 }
  0x2c   : > { %p1279_p9 = scmp.ne.s32.totalorder %s1630_s23, %s1278_s28  ;;  %p1287_p12 = scmp.lt.s32.totalorder %s1278_s28, %s1278_s28 }
  0x2e   : > { %p1281_p10 = pnand %p1279_p9, %p1995_p13  ;;  %p1288_p0 = por %p1287_p12, %p1286_p2 }
  0x30   : > { %p1282_p1 = pneg %p1281_p10 }
  0x32   : > { %p1289_p6 = pnand %p1288_p0, %p1282_p1 }
  0x34   : > { %1292 = shalt.err (!%p1289_p6)
}
  0x35   : > { %s1992_s29 = smov 128   ;;  %s1993_s30 = smov 8  }
  0x36   : > { %1183 = dma.hbm_to_vmem [thread:$0]  (!%p1637_p11), %s2019_s5, 512, %s1630_s23, [#allocation9], %s1992_s29, %s1992_s29, %s1993_s30  }
  0x37   : > { %p39_p1 = scmp.eq.s32.totalorder %s38_s27, 0  ;;  %p48_p2 = scmp.ne.s32.totalorder %s1513_s15, %s1509_s14 }
  0x38   : > { %p49_p6 = scmp.eq.s32.totalorder %s1517_s16, 0  ;;  %p1206_p10 = scmp.lt.s32.totalorder %s1517_s16, 2 }
  0x39   : > { %s1682_s18 = scalar_select %p39_p1, %s1513_s15, %s41_s26  }
  0x3a   : > { %p50_p3 = por %p49_p6, %p48_p2  ;;  %p2021_p5 = scmp.eq.s32.totalorder %s1607_s17, 1 }
  0x3b   : > { %2020 = sst [smem:[#allocation23_spill]] %s1682_s18  ;;  %s1691_s28 = sand.u32 1, %s1513_s15  }
  0x3c   : > { %p1686_p7 = por %p2021_p5, %p48_p2  ;;  %s364_s25 = sand.u32 1, %s1517_s16  }
  0x3d   : > { %p1694_p9 = pnand %p1206_p10, %p50_p3  ;;  %s1085_s23 = sshll.u32 %s1691_s28, 1 }
  0x3e   : > { %s2022_s22 = scalar_select %p1686_p7, 1, 0 }
  0x3f   : > { %s2023_s20 = scalar_select %p1694_p9, 1, 0 }
  0x40   : > { %s1086_s27 = sshll.u32 %s1517_s16, 5  ;;  %s2024_s1 = sld [smem:[#allocation24_spill]] }
  0x41   : > { %s368_s29 = scalar_lea.vmem [#allocation5], %s1085_s23  ;;  %s1707_s5 = scalar_lea.sflag [#allocation6], %s364_s25 }
  0x42   : > { %s375_s30 = sshll.u32 %s368_s29, 4  ;;  %p1713_p0 = pneg %p1694_p9  ;;  %s1705_s30 = int_to_ptr.vmem [resolvable:$true] %s375_s30 }
  0x44   : > { %s2025_s15 = scalar_select %p1713_p0, 1, 0 }
  0x46   : > { %s1703_s12 = scalar_lea.hbm %s2024_s1, %s1086_s27  ;;  %s1298_s23 = scalar_lea.hbm %s2024_s1, 64 }
  0x47   : > { %s1293_s18 = scalar_lea.hbm %s1703_s12, 32  ;;  %p1299_p6 = scmp.lt.u32.totalorder %s1703_s12, %s2024_s1 }
  0x48   : > { %p1294_p12 = scmp.ne.s32.totalorder %s1703_s12, %s1293_s18  ;;  %p1300_p10 = scmp.lt.u32.totalorder %s1298_s23, %s1293_s18 }
  0x49   : > { %p1302_p5 = scmp.lt.u32.totalorder %s1293_s18, %s1703_s12 }
  0x4a   : > { %p1296_p1 = pnand %p1713_p0, %p1294_p12  ;;  %p1301_p3 = por %p1300_p10, %p1299_p6 }
  0x4c   : > { %p1297_p2 = pneg %p1296_p1  ;;  %p1303_p13 = por %p1302_p5, %p1301_p3 }
  0x4e   : > { %p1304_p7 = pnand %p1303_p13, %p1297_p2 }
  0x50   : > { %1307 = shalt.err (!%p1304_p7)
}
  0x51   : > { %s1308_s25 = scalar_lea.vmem %s1705_s30, 32  ;;  %s1522_s27 = smov [#allocation5]  }
  0x52   : > { %p1309_p12 = scmp.ne.s32.totalorder %s1705_s30, %s1308_s25  ;;  %s1313_s11 = sshll.u32 %s1522_s27, 4  ;;  %s1314_s11 = int_to_ptr.vmem [resolvable:$false] %s1313_s11 }
  0x53   : > { %s1315_s29 = scalar_lea.vmem %s1314_s11, 64  ;;  %p1316_p8 = scmp.lt.s32.totalorder %s1705_s30, %s1314_s11 }
  0x54   : > { %p1311_p1 = pnand %p1309_p12, %p1713_p0  ;;  %p1317_p11 = scmp.lt.s32.totalorder %s1315_s29, %s1308_s25 }
  0x56   : > { %p1312_p4 = pneg %p1311_p1  ;;  %p1318_p6 = por %p1317_p11, %p1316_p8 }
  0x58   : > { %p1319_p10 = pnand %p1318_p6, %p1312_p4 }
  0x5a   : > { %1322 = shalt.err (!%p1319_p10)
}
  0x5b   : > { %1193 = dma.hbm_to_vmem [thread:$0]  (!%p1694_p9), %s1703_s12, 32, %s1705_s30, %s1707_s5  }
  0x5c   : > { %s1523_s18 = smov [#allocation10]   ;;  %s2007_s26 = sshll.u32 %s1691_s28, 3 }
  0x5d   : > { %s329_s23 = sshll.u32 %s1523_s18, 4  ;;  %s1323_s11 = scalar_lea.hbm %s1984_s7, 512  ;;  %s330_s23 = int_to_ptr.vmem [resolvable:$true] %s329_s23 }
  0x5e   : > { %p1324_p4 = scmp.ne.s32.totalorder %s1984_s7, %s1323_s11  ;;  %p2026_p8 = scmp.ne.s32.totalorder %s2017_s24, 0 }
  0x5f   : > { %p1330_p2 = scmp.lt.u32.totalorder %s1323_s11, %s1984_s7 }
  0x60   : > { %p2027_p11 = pneg %p2026_p8 }
  0x62   : > { %p1326_p13 = pnand %p1324_p4, %p2027_p11 }
  0x64   : > { %p1327_p7 = pneg %p1326_p13 }
  0x66   : > { %p1332_p3 = pnand %p1330_p2, %p1327_p7 }
  0x68   : > { %1335 = shalt.err (!%p1332_p3)
}
  0x69   : > { %s1336_s30 = scalar_lea.vmem %s330_s23, 512  ;;  %p2028_p12 = pmov %p2027_p11 }
  0x6a   : > { %p1337_p5 = scmp.ne.s32.totalorder %s330_s23, %s1336_s30  ;;  %p1344_p10 = scmp.lt.s32.totalorder %s330_s23, %s330_s23 }
  0x6b   : > { %p1345_p9 = scmp.lt.s32.totalorder %s1336_s30, %s1336_s30 }
  0x6c   : > { %p1339_p1 = pnand %p1337_p5, %p2028_p12 }
  0x6d   : > { %p1346_p0 = por %p1345_p9, %p1344_p10 }
  0x6e   : > { %p1340_p6 = pneg %p1339_p1 }
  0x70   : > { %p1347_p4 = pnand %p1346_p0, %p1340_p6 }
  0x72   : > { %1350 = shalt.err (!%p1347_p4)
}
  0x73   : > { %s2029_s1 = smov 8   ;;  %s2030_s12 = smov 128  }
  0x74   : > { %1186 = dma.hbm_to_vmem [thread:$0]  (!%p2026_p8), %s1984_s7, 512, %s330_s23, [#allocation9], %s2030_s12, %s2030_s12, %s2029_s1  }
  0x75   : > { %s1084_s18 = sshll.u32 %s1517_s16, 7  ;;  %s350_s24 = scalar_lea.vmem [#allocation2], %s2007_s26 }
  0x76   : > { %s1767_s25 = scalar_lea.hbm %s1977_s0, %s1084_s18  ;;  %s357_s29 = sshll.u32 %s350_s24, 4  ;;  %s358_s29 = int_to_ptr.vmem [resolvable:$true] %s357_s29 }
  0x77   : > { %s347_s30 = scalar_lea.sflag [#allocation3], %s1691_s28  ;;  %s1351_s9 = scalar_lea.hbm %s1767_s25, 128 }
  0x78   : > { %p1352_p9 = scmp.ne.s32.totalorder %s1767_s25, %s1351_s9  ;;  %p2031_p0 = scmp.ne.s32.totalorder %s2025_s15, 0 }
  0x79   : > { %s1356_s12 = scalar_lea.hbm %s1977_s0, 256  ;;  %p1357_p13 = scmp.lt.u32.totalorder %s1767_s25, %s1977_s0 }
  0x7a   : > { %p1354_p8 = pnand %p1352_p9, %p2031_p0  ;;  %p1358_p7 = scmp.lt.u32.totalorder %s1356_s12, %s1351_s9 }
  0x7b   : > { %p1360_p3 = scmp.lt.u32.totalorder %s1351_s9, %s1767_s25 }
  0x7c   : > { %p1355_p11 = pneg %p1354_p8  ;;  %p1359_p2 = por %p1358_p7, %p1357_p13 }
  0x7e   : > { %p1361_p5 = por %p1360_p3, %p1359_p2 }
  0x80   : > { %p1362_p12 = pnand %p1361_p5, %p1355_p11 }
  0x82   : > { %1365 = shalt.err (!%p1362_p12)
}
  0x83   : > { %s1366_s11 = scalar_lea.vmem %s358_s29, 128  ;;  %s1524_s24 = smov [#allocation2]  }
  0x84   : > { %p1367_p1 = scmp.ne.s32.totalorder %s358_s29, %s1366_s11  ;;  %s1371_s26 = sshll.u32 %s1524_s24, 4  ;;  %s1372_s26 = int_to_ptr.vmem [resolvable:$false] %s1371_s26 }
  0x85   : > { %s1373_s23 = scalar_lea.vmem %s1372_s26, 256  ;;  %p1374_p4 = scmp.lt.s32.totalorder %s358_s29, %s1372_s26 }
  0x86   : > { %p1369_p6 = pnand %p1367_p1, %p2031_p0  ;;  %p1375_p9 = scmp.lt.s32.totalorder %s1373_s23, %s1366_s11 }
  0x88   : > { %p1370_p10 = pneg %p1369_p6  ;;  %p1376_p8 = por %p1375_p9, %p1374_p4 }
  0x8a   : > { %p1377_p7 = pnand %p1376_p8, %p1370_p10 }
  0x8c   : > { %1380 = shalt.err (!%p1377_p7)
}
  0x8d   : > { %p2032_p13 = scmp.ne.s32.totalorder %s2023_s20, 0  ;;  %s1794_s12 = scalar_lea.hbm %s1979_s2, %s1084_s18 }
  0x8e   : > { %s2033_s13 = sshll.u32 %s1691_s28, 3  ;;  %s1381_s11 = scalar_lea.hbm %s1794_s12, 128 }
  0x8f   : > { %1190 = dma.hbm_to_vmem [thread:$0]  (!%p2032_p13), %s1767_s25, 128, %s358_s29, %s347_s30  }
  0x90   : > { %s386_s26 = scalar_lea.vmem [#allocation7], %s2033_s13  ;;  %p1382_p11 = scmp.ne.s32.totalorder %s1794_s12, %s1381_s11 }
  0x91   : > { %s393_s27 = sshll.u32 %s386_s26, 4  ;;  %s1386_s30 = scalar_lea.hbm %s1979_s2, 256  ;;  %s394_s27 = int_to_ptr.vmem [resolvable:$true] %s393_s27 }
  0x92   : > { %p1384_p2 = pnand %p1382_p11, %p2031_p0  ;;  %p1387_p5 = scmp.lt.u32.totalorder %s1794_s12, %s1979_s2 }
  0x93   : > { %p1388_p12 = scmp.lt.u32.totalorder %s1386_s30, %s1381_s11  ;;  %p1390_p6 = scmp.lt.u32.totalorder %s1381_s11, %s1794_s12 }
  0x94   : > { %p1385_p3 = pneg %p1384_p2 }
  0x95   : > { %p1389_p1 = por %p1388_p12, %p1387_p5 }
  0x97   : > { %p1391_p10 = por %p1390_p6, %p1389_p1 }
  0x99   : > { %p1392_p4 = pnand %p1391_p10, %p1385_p3 }
  0x9b   : > { %1395 = shalt.err (!%p1392_p4)
}
  0x9c   : > { %s1396_s28 = scalar_lea.vmem %s394_s27, 128  ;;  %s1525_s23 = smov [#allocation7]  }
  0x9d   : > { %p1397_p9 = scmp.ne.s32.totalorder %s394_s27, %s1396_s28  ;;  %s1401_s9 = sshll.u32 %s1525_s23, 4  ;;  %s1402_s9 = int_to_ptr.vmem [resolvable:$false] %s1401_s9 }
  0x9e   : > { %s1403_s1 = scalar_lea.vmem %s1402_s9, 256  ;;  %p1404_p11 = scmp.lt.s32.totalorder %s394_s27, %s1402_s9 }
  0x9f   : > { %p1399_p8 = pnand %p1397_p9, %p2031_p0  ;;  %p1405_p2 = scmp.lt.s32.totalorder %s1403_s1, %s1396_s28 }
  0xa1   : > { %p1400_p7 = pneg %p1399_p8  ;;  %p1406_p13 = por %p1405_p2, %p1404_p11 }
  0xa3   : > { %p1407_p5 = pnand %p1406_p13, %p1400_p7 }
  0xa5   : > { %1410 = shalt.err (!%p1407_p5)
}
  0xa6   : > { %p2034_p12 = scmp.ne.s32.totalorder %s2023_s20, 0  ;;  %p2035_p3 = scmp.ne.s32.totalorder %s2016_s21, 0 }
  0xa7   : > { %s1819_s15 = sand.u32 (!%p2035_p3), 1, %s1509_s14   ;;  %p2036_p0 = scmp.ne.s32.totalorder (!%p2035_p3), %s2013_s19, 0 }
  0xa8   : > { %1196 = dma.hbm_to_vmem [thread:$0]  (!%p2034_p12), %s1794_s12, 128, %s394_s27, %s1707_s5  }
  0xa9   : > { %402 = sbr.rel (%p2035_p3) target bundleno = 1614 (0x64e), region = 56  ;;  %s1822_s13 = sshll.u32 (!%p2035_p3), %s1819_s15, 3 }
  0xaa   : > { %s405_s26 = scalar_lea.sflag (!%p2035_p3), [#allocation3], %s1819_s15  ;;  %s408_s11 = scalar_lea.vmem (!%p2035_p3), [#allocation2], %s1822_s13 }
  0xb0   : > { %1484 = dma.done.wait (%p2036_p0), %s405_s26, 128  }
  0xb1   : > { %1486 = vsyncadd (%p2036_p0), %s405_s26, 4294967168  ;;  %s413_s5 = sand.u32 1, %s1607_s17   ;;  %s1091_s20 = sshll.u32 %s1819_s15, 1 }
  0xb2   : > { %s414_s21 = scalar_lea.sflag [#allocation6], %s413_s5  ;;  %s1832_s12 = scalar_lea.vmem [#allocation5], %s1091_s20 }
  0xb3   : > { %1488 = dma.done.wait (%p2036_p0), %s414_s21, 160  }
  0xb4   : > { %1490 = vsyncadd (%p2036_p0), %s414_s21, 4294967136  ;;  %s426_s27 = scalar_lea.vmem [#allocation7], %s1822_s13  ;;  %p2037_p13 = scmp.eq.s32.totalorder %s1607_s17, 0 }
  0xb6   : > { %1492 = dma.done.wait (%p2037_p13), [#allocation9], 1024   ;;  %p2038_p1 = pmov %p2037_p13 }
  0xb7   : > { %vm487_vm0 = vcmask 261120   ;;  %v486_v0 = vld [vmem:[%s408_s11] sm:$0xff]  ;;  %v1526_v10 = vmov 0.0|0.0   ;;  %v527_v13 = vld [vmem:[#allocation8 + $0x10] sm:$0xff]  ;;  %vm1527_vm1 = vmmov 0   ;;  %v1528_v18 = vmov 0.0  }
  0xb8   : > { %1494 = vsyncadd (%p2038_p1), [#allocation9], 4294966272  ;;  %v488_v1 = vsel %vm487_vm0, %v486_v0, 0.0  ;;  %v525_v7 = vld [vmem:[#allocation8] sm:$0xff]  ;;  %v526_v8 = vld [vmem:[#allocation8 + $0x8] sm:$0xff]  ;;  %1150 = vmatprep.subr.bf16.mxu0 %v1526_v10  ;;  %1156 = vmatprep.subr.bf16.mxu1 %v1526_v10  ;;  %v767_v44 = vlaneseq  ;;  %vm782_vm9 = vcmask 64512  }
  0xb9   : > { %489 = vadd.xlane.f32.xlu0 %v488_v1  ;;  %v609_v9 = vld [vmem:[#allocation10] sm:$0xff]  ;;  %v1151_v11 = vpack.c.bf16 %v526_v8, %v525_v7  ;;  %v610_v12 = vld [vmem:[#allocation10 + $0x8] sm:$0xff]  ;;  %v528_v14 = vld [vmem:[#allocation8 + $0x18] sm:$0xff]  ;;  %1131 = vmatprep.mubr.msk.f32.mxu0 %vm1527_vm1, %v1528_v18  ;;  %s485_s9 = scalar_lea.vmem [#allocation12], %s1822_s13  ;;  %s1107_s1 = sshll.u32 %s1607_s17, 7 }
  0xba   : > { %v1157_v15 = vpack.c.bf16 %v610_v12, %v609_v9  ;;  %v611_v16 = vld [vmem:[#allocation10 + $0x10] sm:$0xff]  ;;  %v612_v17 = vld [vmem:[#allocation10 + $0x18] sm:$0xff]  ;;  %1142 = vmatprep.mubr.msk.f32.mxu1 %vm1527_vm1, %v1528_v18  ;;  %v1154_v19 = vpack.c.bf16 %v528_v14, %v527_v13  ;;  %v1864_v45 = vshrl.u32 %v767_v44, 7  ;;  %v1866_v46 = vand.u32 127, %v767_v44  ;;  %v776_v49 = vld [vmem:[%s1832_s12] sm:$0x3]  ;;  %s1898_s5 = scalar_lea.hbm %s1987_s10, %s1107_s1 }
  0xbb   : > { %1152 = vmatpush3.bf16.msra.mxu0 %v1151_v11  ;;  %v1160_v20 = vpack.c.bf16 %v612_v17, %v611_v16  ;;  %v1097_v29 = vld [vmem:[%s1980_s3] ss:$0 sm:$0xff]  ;;  %v777_v50 = vunpack.c.0.s8 %v776_v49  ;;  %s914_s20 = sshll.u32 %s485_s9, 4  ;;  %s888_s21 = scalar_lea.sflag [#allocation13], %s1819_s15  ;;  %s915_s20 = int_to_ptr.vmem [resolvable:$true] %s914_s20 }
  0xbc   : > { %1158 = vmatpush3.bf16.msra.mxu1 %v1157_v15  ;;  %1153 = vmatprep.subr.bf16.mxu0 %v1526_v10  ;;  %v1098_v32 = vld [vmem:[%s1981_s4] ss:$0 sm:$0xff]  ;;  %v771_v47 = vadd.s32 1, %v1864_v45  ;;  %v773_v48 = vadd.s32 1, %v1866_v46  ;;  %vm855_vm12 = vcmp.ge.s32.totalorder %v1866_v46, 1  ;;  %vm856_vm13 = vcmp.le.s32.totalorder %v1866_v46, %v1864_v45  ;;  %s1411_s12 = scalar_lea.vmem %s915_s20, 128 }
  0xbd   : > { %1159 = vmatprep.subr.bf16.mxu1 %v1526_v10  ;;  %v1099_v35 = vld [vmem:[%s1983_s6] ss:$0 sm:$0xff]  ;;  %vm778_vm6 = vcmp.ne.s32.totalorder %v777_v50, 0  ;;  %vm857_vm14 = vmand %vm855_vm12, %vm856_vm13  ;;  %p1412_p6 = scmp.ne.s32.totalorder %s915_s20, %s1411_s12  ;;  %p2039_p10 = scmp.ne.s32.totalorder %s2022_s22, 0 }
  0xbe   : > { %v1101_v36 = vld [vmem:[%s1985_s8] ss:$0 sm:$0xff]  ;;  %vm772_vm4 = vcmp.eq.s32.totalorder %v1866_v46, %v771_v47  ;;  %vm774_vm5 = vcmp.eq.s32.totalorder %v1864_v45, %v773_v48 }
  0xbf   : > { %1155 = vmatpush3.bf16.msra.mxu0 %v1154_v19  ;;  %vm779_vm7 = vmor %vm772_vm4, %vm774_vm5  ;;  %p1413_p4 = pnand %p1412_p6, %p2039_p10 }
  0xc0   : > { %1161 = vmatpush3.bf16.msra.mxu1 %v1160_v20  ;;  %1145 = vmatprep.subr.mxu0 %v1528_v18  ;;  %vm780_vm8 = vmand %vm778_vm6, %vm779_vm7 }
  0xc1   : > { %p1414_p9 = pneg %p1413_p4 }
 0x146   : > { %v490_v2 = vpop.xlane.xlu0 %489 }
 0x147   : > { %v492_v3 = vmul.f32 0.03125, %v490_v2  ;;  %v794_v2 = vld [vmem:[%s426_s27] sm:$0xff]  ;;  %s1529_s27 = smov [#allocation12]  }
 0x148   : > { %s1415_s19 = sshll.u32 %s1529_s27, 4  ;;  %s1416_s19 = int_to_ptr.vmem [resolvable:$false] %s1415_s19 }
 0x149   : > { %v493_v4 = vsub.f32 %v486_v0, %v492_v3  ;;  %s1417_s25 = scalar_lea.vmem %s1416_s19, 256  ;;  %p1418_p8 = scmp.lt.s32.totalorder %s915_s20, %s1416_s19 }
 0x14a   : > { %p1419_p7 = scmp.lt.s32.totalorder %s1417_s25, %s1411_s12 }
 0x14b   : > { %v494_v5 = vmul.f32 %v493_v4, %v493_v4  ;;  %v515_v30 = vmul.f32 %v1097_v29, %v493_v4 }
 0x14c   : > { %p1420_p11 = por %p1419_p7, %p1418_p8 }
 0x14d   : > { %v495_v6 = vsel %vm487_vm0, %v494_v5, 0.0  ;;  %v836_v5 = vsub.f32 1.0, %v794_v2 }
 0x14e   : > { %496 = vadd.xlane.f32.xlu0 %v495_v6  ;;  %p1421_p2 = pnand %p1420_p11, %p1414_p9 }
 0x1db   : > { %v497_v21 = vpop.xlane.xlu0 %496 }
 0x1dc   : > { %v498_v22 = vmul.f32 0.032258064, %v497_v21 }
 0x1de   : > { %1249 = vrsqrt.f32 %v498_v22  ;;  %vm501_vm2 = vcmp.eq.f32.partialorder %v498_v22, inf  ;;  %v504_v25 = vand.u32 2147483648, %v498_v22  ;;  %vm503_vm3 = vcmp.eq.f32.partialorder %v498_v22, 0.0 }
 0x1e8   : > { %v1250_v23 = vpop.eup %1249 }
 0x1e9   : > { %v500_v24 = vmul.f32 %v1250_v23, %v498_v22 }
 0x1eb   : > { %v502_v26 = vsel %vm501_vm2, %v498_v22, %v500_v24 }
 0x1ec   : > { %v505_v27 = vsel %vm503_vm3, %v504_v25, %v502_v26 }
 0x1ed   : > { %v506_v28 = vadd.f32 1e-06, %v505_v27 }
 0x1ef   : > { %1251 = vrcp.f32 %v506_v28 }
 0x1f9   : > { %v1252_v31 = vpop.eup %1251 }
 0x1fa   : > { %v516_v33 = vmul.f32 %v1252_v31, %v515_v30 }
 0x1fc   : > { %v524_v34 = vadd.f32 %v1098_v32, %v516_v33 }
 0x1fe   : > { %1132 = vmatmul.mubr.msk.f32.vlgmr.msra.gmra.mrb[0].mxu0 %vm487_vm0, %v524_v34  ;;  %1143 = vmatmul.mubr.msk.f32.vlgmr.msra.gmra.mrb[0].mxu1 %vm487_vm0, %v524_v34 }
 0x1ff   : > { %1147 = vmatprep.mubr.msk.f32.mxu0 %vm1527_vm1, %v1528_v18 }
 0x2d1   : > { %v605_v37 = vpop.f32.mrb[0].mxu0  ;;  %v686_v38 = vpop.f32.mrb[0].mxu1 }
 0x2d2   : > { %v606_v39 = vadd.f32 %v1099_v35, %v605_v37  ;;  %v687_v40 = vadd.f32 %v1101_v36, %v686_v38  ;;  %v1133_v41 = vpop.f32.mrb[1].mxu0  ;;  %v1144_v42 = vpop.f32.mrb[1].mxu1 }
 0x2d4   : > { %v690_v43 = vmul.f32 0.00390625, %v687_v40  ;;  %1146 = vmatpush3.xpose.msk.msra.mxu0 %vm487_vm0, %v606_v39 }
 0x2d7   : > { %1148 = vmatmul.mubr.msk.f32.vlgmr.msra.gmra.mrb[2].mxu0 %vm487_vm0, %v690_v43 }
 0x3aa   : > { %v763_v51 = vpop.f32.mrb[2].mxu0 }
 0x3ab   : > { %v781_v52 = vsel %vm780_vm8, %v763_v51, -1e+09  ;;  %v1149_v53 = vpop.f32.mrb[3].mxu0 }
 0x3ac   : > { %v783_v54 = vsel %vm782_vm9, %v781_v52, -inf }
 0x3ad   : > { %784 = vmax.xlane.f32.xlu1 %v783_v54 }
 0x43a   : > { %v785_v55 = vpop.xlane.xlu1 %784 }
 0x43b   : > { %v786_v56 = vsub.f32 %v781_v52, %v785_v55 }
 0x43d   : > { %v787_v57 = vmul.f32 1.442695, %v786_v56 }
 0x43f   : > { %1253 = vpow2.f32 %v787_v57 }
 0x449   : > { %v1254_v58 = vpop.eup %1253 }
 0x44a   : > { %v789_v59 = vsel %vm782_vm9, %v1254_v58, 0.0 }
 0x44b   : > { %790 = vadd.xlane.f32.xlu1 %v789_v59 }
 0x4d8   : > { %v791_v60 = vpop.xlane.xlu1 %790 }
 0x4d9   : > { %1255 = vrcp.f32 %v791_v60 }
 0x4e3   : > { %v1256_v61 = vpop.eup %1255 }
 0x4e4   : > { %v793_v62 = vmul.f32 %v1256_v61, %v1254_v58 }
 0x4e6   : > { %795 = vxpose.xlu0.b32.start.end [1/1] (short) (narrow) %v793_v62, 8 }
 0x566   : > { %v811_v63 = vpop.trf.xlu0 }
 0x567   : > { %v827_v0 = vmul.f32 %v811_v63, %v793_v62 }
 0x569   : > { %v828_v1 = vadd.f32 1e-09, %v827_v0 }
 0x56b   : > { %1257 = vrsqrt.f32 %v828_v1  ;;  %vm831_vm10 = vcmp.eq.f32.partialorder %v828_v1, inf  ;;  %v834_v6 = vand.u32 2147483648, %v828_v1  ;;  %vm833_vm11 = vcmp.eq.f32.partialorder %v828_v1, 0.0 }
 0x575   : > { %v1258_v3 = vpop.eup %1257 }
 0x576   : > { %v830_v4 = vmul.f32 %v1258_v3, %v828_v1 }
 0x578   : > { %v832_v7 = vsel %vm831_vm10, %v828_v1, %v830_v4 }
 0x579   : > { %v835_v8 = vsel %vm833_vm11, %v834_v6, %v832_v7 }
 0x57a   : > { %v837_v9 = vmul.f32 %v836_v5, %v835_v8 }
 0x57c   : > { %v1879_v10 = vadd.f32 %v837_v9, %v794_v2 }
 0x57e   : > { %v839_v11 = vsel %vm772_vm4, %v1879_v10, 0.0  ;;  %881 = vst.msk [vmem:[%s485_s9] sm:$0xff] %vm782_vm9, %v1879_v10 }
 0x57f   : > { %v840_v12 = vsel %vm782_vm9, %v839_v11, 0.0 }
 0x580   : > { %841 = vadd.xlane.f32.xlu1 %v840_v12  ;;  %v846_v13 = vrot.slane %v840_v12, 4 }
 0x582   : > { %v847_v14 = vadd.f32 %v846_v13, %v840_v12 }
 0x584   : > { %v848_v15 = vrot.slane %v847_v14, 2 }
 0x586   : > { %v849_v16 = vadd.f32 %v848_v15, %v847_v14 }
 0x588   : > { %v850_v17 = vrot.slane %v849_v16, 1 }
 0x58a   : > { %v851_v18 = vadd.f32 %v850_v17, %v849_v16 }
 0x58c   : > { %v852_v19 = vadd.f32 1e-09, %v851_v18 }
 0x58e   : > { %1259 = vlog2.f32 %v852_v19 }
 0x598   : > { %v1260_v20 = vpop.eup %1259 }
 0x599   : > { %v854_v21 = vmul.f32 0.6931472, %v1260_v20 }
 0x59b   : > { %v858_v22 = vsel %vm857_vm14, %v854_v21, 0.0 }
 0x59c   : > { %v859_v23 = vsel %vm782_vm9, %v858_v22, 0.0 }
 0x59d   : > { %860 = vadd.xlane.f32.xlu1 %v859_v23 }
 0x59e   : > { %1424 = shalt.err (!%p1421_p2)
}
 0x59f   : > { %s1425_s29 = scalar_lea.hbm %s1898_s5, 128  ;;  %s1429_s18 = scalar_lea.hbm %s1987_s10, 256 }
 0x5a0   : > { %p1426_p5 = scmp.ne.s32.totalorder %s1898_s5, %s1425_s29  ;;  %p1430_p0 = scmp.lt.u32.totalorder %s1898_s5, %s1987_s10 }
 0x5a1   : > { %p1431_p13 = scmp.lt.u32.totalorder %s1429_s18, %s1425_s29  ;;  %p1433_p6 = scmp.lt.u32.totalorder %s1425_s29, %s1898_s5 }
 0x5a2   : > { %p1427_p12 = pnand %p1426_p5, %p2039_p10 }
 0x5a3   : > { %p1432_p1 = por %p1431_p13, %p1430_p0 }
 0x5a4   : > { %p1428_p3 = pneg %p1427_p12 }
 0x5a5   : > { %p1434_p4 = por %p1433_p6, %p1432_p1 }
 0x5a7   : > { %p1435_p9 = pnand %p1434_p4, %p1428_p3 }
 0x5a9   : > { %1438 = shalt.err (!%p1435_p9)
}
 0x5aa   : > { %1177 = dma.vmem_to_hbm [thread:$0]  (%p2039_p10), %s915_s20, 128, %s1898_s5, %s888_s21   ;;  %vm862_vm15 = vcmp.lt.s32.totalorder %v1864_v45, %v1866_v46  ;;  %vm872_vm0 = vcmp.gt.s32.totalorder %v1866_v46, %v1864_v45  ;;  %vm775_vm1 = vcmp.eq.s32.totalorder %v1864_v45, %v1866_v46 }
 0x5ab   : > { %s478_s9 = scalar_lea.vmem [#allocation11], %s1822_s13  ;;  %v878_v42 = vsel %vm775_vm1, %v1879_v10, 1e-09  ;;  %s2040_s20 = sld [smem:[#allocation26_spill]] }
 0x5ac   : > { %s901_s26 = sshll.u32 %s478_s9, 4  ;;  %s883_s13 = scalar_lea.sflag [#allocation4], %s1819_s15  ;;  %s1934_s26 = int_to_ptr.vmem [resolvable:$true] %s901_s26 }
 0x5ad   : > { %s1439_s12 = scalar_lea.vmem %s1934_s26, 128  ;;  %s1530_s27 = smov [#allocation11]  }
 0x5ae   : > { %p1440_p8 = scmp.ne.s32.totalorder %s1934_s26, %s1439_s12  ;;  %s1443_s17 = sshll.u32 %s1530_s27, 4  ;;  %s1444_s17 = int_to_ptr.vmem [resolvable:$false] %s1443_s17 }
 0x5af   : > { %s1445_s19 = scalar_lea.vmem %s1444_s17, 256  ;;  %p1446_p2 = scmp.lt.s32.totalorder %s1934_s26, %s1444_s17 }
 0x5b0   : > { %p1441_p7 = pnand %p1440_p8, %p2039_p10  ;;  %p1447_p5 = scmp.lt.s32.totalorder %s1445_s19, %s1439_s12 }
 0x5b1   : > { %s1932_s21 = scalar_lea.hbm %s2040_s20, %s1107_s1 }
 0x5b2   : > { %p1442_p11 = pneg %p1441_p7  ;;  %p1448_p12 = por %p1447_p5, %p1446_p2 }
 0x5b4   : > { %p1449_p3 = pnand %p1448_p12, %p1442_p11 }
 0x60d   : > { %v842_v24 = vpop.xlane.xlu1 %841 }
 0x60e   : > { %v843_v25 = vadd.f32 1e-09, %v842_v24 }
 0x610   : > { %1261 = vlog2.f32 %v843_v25 }
 0x61a   : > { %v1262_v26 = vpop.eup %1261 }
 0x61b   : > { %v845_v27 = vmul.f32 0.6931472, %v1262_v26 }
 0x61d   : > { %v863_v28 = vsel %vm862_vm15, %v845_v27, 0.0 }
 0x61e   : > { %v864_v29 = vsel %vm782_vm9, %v863_v28, 0.0 }
 0x61f   : > { %v865_v30 = vrot.slane %v864_v29, 4 }
 0x621   : > { %v866_v31 = vadd.f32 %v865_v30, %v864_v29 }
 0x623   : > { %v867_v32 = vrot.slane %v866_v31, 2 }
 0x625   : > { %v868_v33 = vadd.f32 %v867_v32, %v866_v31 }
 0x627   : > { %v869_v34 = vrot.slane %v868_v33, 1 }
 0x629   : > { %v870_v35 = vadd.f32 %v869_v34, %v868_v33 }
 0x62a   : > { %v861_v36 = vpop.xlane.xlu1 %860 }
 0x62b   : > { %v871_v37 = vsub.f32 %v870_v35, %v861_v36 }
 0x62d   : > { %v873_v38 = vsub.f32 0.0, %v871_v37 }
 0x62f   : > { %v874_v39 = vsel %vm872_vm0, %v871_v37, %v873_v38 }
 0x630   : > { %v875_v40 = vmul.f32 1.442695, %v874_v39 }
 0x632   : > { %1263 = vpow2.f32 %v875_v40 }
 0x63c   : > { %v1264_v41 = vpop.eup %1263 }
 0x63d   : > { %v877_v43 = vsel %vm775_vm1, 0.0, %v1264_v41 }
 0x63e   : > { %v879_v44 = vadd.f32 %v878_v42, %v877_v43 }
 0x640   : > { %880 = vst.msk [vmem:[%s478_s9] sm:$0xff] %vm782_vm9, %v879_v44 }
 0x641   : > { %1452 = shalt.err (!%p1449_p3)
}
 0x642   : > { %s1453_s15 = scalar_lea.hbm %s1932_s21, 128  ;;  %s1457_s29 = scalar_lea.hbm %s2040_s20, 256 }
 0x643   : > { %p1454_p0 = scmp.ne.s32.totalorder %s1932_s21, %s1453_s15  ;;  %p1458_p6 = scmp.lt.u32.totalorder %s1932_s21, %s2040_s20 }
 0x644   : > { %p1459_p4 = scmp.lt.u32.totalorder %s1457_s29, %s1453_s15  ;;  %p1461_p8 = scmp.lt.u32.totalorder %s1453_s15, %s1932_s21 }
 0x645   : > { %p1455_p13 = pnand %p1454_p0, %p2039_p10 }
 0x646   : > { %p1460_p9 = por %p1459_p4, %p1458_p6 }
 0x647   : > { %p1456_p1 = pneg %p1455_p13 }
 0x648   : > { %p1462_p7 = por %p1461_p8, %p1460_p9 }
 0x64a   : > { %p1463_p11 = pnand %p1462_p7, %p1456_p1 }
 0x64c   : > { %1466 = shalt.err (!%p1463_p11)
}
 0x64d   : > { %1176 = dma.vmem_to_hbm [thread:$0]  (%p2039_p10), %s1934_s26, 128, %s1932_s21, %s883_s13  }
 0x64e PF: > { %s2041_s18 = sld [smem:[#allocation19_spill]]  ;;  %s2042_s28 = sld [smem:[#allocation21_spill]] }
 0x64f   : > { %p2044_p5 = scmp.ge.s32.totalorder %s1517_s16, 2 }
 0x654   : > { %s926_s23 = sand.u32 1, %s2041_s18   ;;  %p2043_p2 = scmp.ne.s32.totalorder %s2042_s28, 0 }
 0x655   : > { %s927_s9 = scalar_lea.sflag [#allocation4], %s926_s23 }
 0x656   : > { %p1198_p12 = pnand %p2044_p5, %p2043_p2 }
 0x658   : > { %1496 = dma.done.wait (!%p1198_p12), %s927_s9, 128  }
 0x659   : > { %1498 = vsyncadd (!%p1198_p12), %s927_s9, 4294967168  ;;  %s936_s11 = scalar_lea.sflag [#allocation13], %s926_s23 }
 0x65a   : > { %1500 = dma.done.wait (!%p1198_p12), %s936_s11, 128  }
 0x65b   : > { %1502 = vsyncadd (!%p1198_p12), %s936_s11, 4294967168  ;;  %s2045_s16 = sld [smem:[#allocation22_spill]]  ;;  %s2046_s22 = sld [smem:[#allocation20_spill]] }
 0x65c   : > { %s2047_s15 = sld [smem:[#allocation23_spill]]  ;;  %s2048_s13 = smov %s1509_s14 }
 0x661   : > { %p31_p10 = scmp.ge.s32.totalorder %s2045_s16, 4   ;;  %s2049_s14 = smov %s2046_s22 }
 0x663   :  { %33 = sbr.rel (!%p31_p10) target bundleno = 14 (0xe), region = 150 }
 0x66a   :  { %941 = vsyncpa [#allocation3], 1 }
 0x66b   :  { %943 = vsyncpa [#allocation3 + $0x1], 1 }
 0x66c   :  { %944 = vsyncpa [#allocation6], 1 }
 0x66d   :  { %946 = vsyncpa [#allocation6 + $0x1], 1 }
 0x66e   :  { %947 = vsyncpa [#allocation9], 1 }
 0x66f   :  { %948 = vsyncpa [#allocation4], 1 }
 0x670   :  { %950 = vsyncpa [#allocation4 + $0x1], 1 }
 0x671   :  { %951 = vsyncpa [#allocation13], 1 }
 0x672   :  { %953 = vsyncpa [#allocation13 + $0x1], 1 }

</bundles_post_ra>
